<compile_context>
chip_gen: v5e
topology: v5e:2x2
jax: 0.10.0
libtpu: 0.0.40
codegen_flags: <defaults>
</compile_context>

<pallas_src>
import functools

import jax
import jax.numpy as jnp
from jax import lax
from jax.experimental import pallas as pl
from jax.experimental.pallas import tpu as pltpu

LANES = 128
SUBLANES = 8


def _mse_partial_kernel(n_sref, p_ref, t_ref, o_ref, acc_ref, *,
                        steps_per_split, tile_rows):
    c = pl.program_id(0)   # split axis ("parallel": sharded across TCs on v7x)
    i = pl.program_id(1)   # streaming/reduction axis ("arbitrary")

    @pl.when(i == 0)
    def _():
        acc_ref[...] = jnp.zeros_like(acc_ref)

    # Native-dtype loads; cast to f32 in-vreg (mandatory on v5e anyway).
    d = p_ref[...].astype(jnp.float32) - t_ref[...].astype(jnp.float32)
    sq = d * d

    # Mask elements past the true element count (partial / fully-OOB last
    # tile).  Uses the *logical* block index so clamped re-reads contribute 0.
    blk = c * steps_per_split + i
    base = blk * (tile_rows * LANES)
    row_ids = lax.broadcasted_iota(jnp.int32, (tile_rows, LANES), 0)
    lane_ids = lax.broadcasted_iota(jnp.int32, (tile_rows, LANES), 1)
    flat_idx = base + row_ids * LANES + lane_ids
    valid = flat_idx < n_sref[0]

    acc_ref[...] += jnp.where(valid, sq, 0.0)

    @pl.when(i == pl.num_programs(1) - 1)
    def _():
        # One-time reduce (tile_rows, 128) -> (8, 128) lane-dense partial sums.
        def body(j, s):
            off = pl.multiple_of(j * SUBLANES, SUBLANES)
            return s + acc_ref[pl.ds(off, SUBLANES), :]

        o_ref[...] = lax.fori_loop(
            0, tile_rows // SUBLANES, body,
            jnp.zeros((SUBLANES, LANES), jnp.float32))


def mse_loss(pred, target, *, tile_rows=2048, nsplit=2):
    assert pred.shape == target.shape, "pred/target shape mismatch"
    n = pred.size
    assert n > 0
    assert n < 2**31, "int32 flat indexing limit"

    p = jnp.ravel(pred)
    t = jnp.ravel(target)

    # Pad only if the flat length is not a multiple of 8*128 (<= 1023 elems of
    # zero pad).  For typical tensor sizes this branch is skipped entirely.
    chunk0 = SUBLANES * LANES
    rem = n % chunk0
    if rem:
        # TODO(synk): for huge oddly-sized inputs this pad is still a full
        # copy; could be avoided with a separate 1-D tail pass.
        pad = chunk0 - rem
        p = jnp.pad(p, (0, pad))
        t = jnp.pad(t, (0, pad))

    rows = p.shape[0] // LANES
    p2 = p.reshape(rows, LANES)
    t2 = t.reshape(rows, LANES)

    # Tile sizing: big tiles amortize per-step overhead; multiple of 8
    # sublanes and never larger than the array.
    tile_rows = max(SUBLANES, (tile_rows // SUBLANES) * SUBLANES)
    eff_tile = min(tile_rows, rows)
    total_blocks = pl.cdiv(rows, eff_tile)

    nsplit = max(1, min(nsplit, total_blocks))
    steps = pl.cdiv(total_blocks, nsplit)
    last_blk = total_blocks - 1

    def in_map(c, i, n_sref):
        # Clamp so fully-OOB trailing blocks (uneven split) stay in bounds;
        # their contribution is masked to zero inside the kernel.
        return (jnp.minimum(c * steps + i, last_blk), 0)

    dtype_bytes = p2.dtype.itemsize
    cost = pl.CostEstimate(
        flops=3 * n,
        transcendentals=0,
        bytes_accessed=2 * n * dtype_bytes + nsplit * SUBLANES * LANES * 4,
    )

    kernel = functools.partial(
        _mse_partial_kernel, steps_per_split=steps, tile_rows=eff_tile)

    partials = pl.pallas_call(
        kernel,
        out_shape=jax.ShapeDtypeStruct((nsplit * SUBLANES, LANES), jnp.float32),
        grid_spec=pltpu.PrefetchScalarGridSpec(
            num_scalar_prefetch=1,
            grid=(nsplit, steps),
            in_specs=[
                pl.BlockSpec((eff_tile, LANES), in_map),
                pl.BlockSpec((eff_tile, LANES), in_map),
            ],
            out_specs=pl.BlockSpec((SUBLANES, LANES),
                                   lambda c, i, n_sref: (c, 0)),
            scratch_shapes=[pltpu.VMEM((eff_tile, LANES), jnp.float32)],
        ),
        compiler_params=pltpu.CompilerParams(
            dimension_semantics=("parallel", "arbitrary"),
        ),
        cost_estimate=cost,
    )(jnp.asarray([n], dtype=jnp.int32), p2, t2)

    return (jnp.sum(partials) / jnp.float32(n)).astype(jnp.float32)


if __name__ == "__main__":
    key = jax.random.PRNGKey(0)
    k1, k2 = jax.random.split(key)
    # Small shapes consistent with the module's forward (pred/target, same shape).
    pred = jax.random.normal(k1, (2, 4, 16, 16), dtype=jnp.float32)
    target = jax.random.normal(k2, (2, 4, 16, 16), dtype=jnp.float32)

    loss = mse_loss(pred, target)
    jax.block_until_ready(loss)

    # Reference check (same semantics as F.mse_loss reduction='mean').
    ref = jnp.mean((pred - target) ** 2)
    assert jnp.allclose(loss, ref, rtol=1e-4, atol=1e-6), (loss, ref)

    print("KERNEL_OK")
</pallas_src>

<mosaic_0001>
module attributes {stable_mosaic.version = 11 : i64} {
  func.func @_mse_partial_kernel(%arg0: i32, %arg1: i32, %arg2: memref<1xi32, #tpu.memory_space<smem>>, %arg3: memref<16x128xf32, #tpu.memory_space<vmem>>, %arg4: memref<16x128xf32, #tpu.memory_space<vmem>>, %arg5: memref<8x128xf32, #tpu.memory_space<vmem>>, %arg6: memref<16x128xf32, #tpu.memory_space<vmem>>) attributes {dimension_semantics = [#tpu.dimension_semantics<parallel>, #tpu.dimension_semantics<arbitrary>], iteration_bounds = array<i64: 1, 1>, scalar_prefetch = 1 : i64, scratch_operands = 1 : i64, tpu.core_type = #tpu.core_type<tc>, window_params = [{transform_indices = @transform_0, window_bounds = array<i64: 16, 128>}, {transform_indices = @transform_1, window_bounds = array<i64: 16, 128>}, {transform_indices = @transform_2, window_bounds = array<i64: 8, 128>}]} {
    %c0_i32 = arith.constant 0 : i32
    %0 = arith.cmpi eq, %arg1, %c0_i32 : i32
    %1 = arith.extui %0 : i1 to i32
    %c0_i32_0 = arith.constant 0 : i32
    %2 = arith.cmpi ne, %1, %c0_i32_0 : i32
    scf.if %2 {
      %cst_11 = arith.constant 0.000000e+00 : f32
      %28 = vector.broadcast %cst_11 : f32 to vector<16x128xf32>
      %c0_12 = arith.constant 0 : index
      %c0_13 = arith.constant 0 : index
      %29 = vector.load %arg6[%c0_12, %c0_13] : memref<16x128xf32, #tpu.memory_space<vmem>>, vector<16x128xf32>
      tpu.vector_store %arg6[%c0_12, %c0_13], %28 {strides = array<i32>} : memref<16x128xf32, #tpu.memory_space<vmem>>, vector<16x128xf32>,
    } else {
    }
    %c0 = arith.constant 0 : index
    %c0_1 = arith.constant 0 : index
    %3 = vector.load %arg3[%c0, %c0_1] : memref<16x128xf32, #tpu.memory_space<vmem>>, vector<16x128xf32>
    %c0_2 = arith.constant 0 : index
    %c0_3 = arith.constant 0 : index
    %4 = vector.load %arg4[%c0_2, %c0_3] : memref<16x128xf32, #tpu.memory_space<vmem>>, vector<16x128xf32>
    %5 = arith.subf %3, %4 : vector<16x128xf32>
    %6 = arith.mulf %5, %5 : vector<16x128xf32>
    %c1_i32 = arith.constant 1 : i32
    %7 = arith.muli %arg0, %c1_i32 : i32
    %8 = arith.addi %7, %arg1 : i32
    %c2048_i32 = arith.constant 2048 : i32
    %9 = arith.muli %8, %c2048_i32 : i32
    %10 = tpu.iota {dimensions = array<i32: 0>} : vector<16x128xi32>
    %11 = tpu.iota {dimensions = array<i32: 1>} : vector<16x128xi32>
    %c128_i32 = arith.constant 128 : i32
    %12 = vector.broadcast %c128_i32 : i32 to vector<16x128xi32>
    %13 = arith.muli %10, %12 : vector<16x128xi32>
    %14 = vector.broadcast %9 : i32 to vector<16x128xi32>
    %15 = arith.addi %14, %13 : vector<16x128xi32>
    %16 = arith.addi %15, %11 : vector<16x128xi32>
    %c0_4 = arith.constant 0 : index
    %17 = memref.load %arg2[%c0_4] : memref<1xi32, #tpu.memory_space<smem>>
    %18 = vector.broadcast %17 : i32 to vector<16x128xi32>
    %19 = arith.cmpi slt, %16, %18 : vector<16x128xi32>
    %c0_5 = arith.constant 0 : index
    %c0_6 = arith.constant 0 : index
    %20 = vector.load %arg6[%c0_5, %c0_6] : memref<16x128xf32, #tpu.memory_space<vmem>>, vector<16x128xf32>
    %cst = arith.constant 0.000000e+00 : f32
    %21 = vector.broadcast %cst : f32 to vector<16x128xf32>
    %22 = arith.select %19, %6, %21 : vector<16x128xi1>, vector<16x128xf32>
    %23 = arith.addf %20, %22 : vector<16x128xf32>
    %c0_7 = arith.constant 0 : index
    %c0_8 = arith.constant 0 : index
    %24 = vector.load %arg6[%c0_7, %c0_8] : memref<16x128xf32, #tpu.memory_space<vmem>>, vector<16x128xf32>
    tpu.vector_store %arg6[%c0_7, %c0_8], %23 {strides = array<i32>} : memref<16x128xf32, #tpu.memory_space<vmem>>, vector<16x128xf32>,
    %c0_i32_9 = arith.constant 0 : i32
    %25 = arith.cmpi eq, %arg1, %c0_i32_9 : i32
    %26 = arith.extui %25 : i1 to i32
    %c0_i32_10 = arith.constant 0 : i32
    %27 = arith.cmpi ne, %26, %c0_i32_10 : i32
    scf.if %27 {
      %cst_11 = arith.constant 0.000000e+00 : f32
      %28 = vector.broadcast %cst_11 : f32 to vector<8x128xf32>
      %c0_i32_12 = arith.constant 0 : i32
      %c2_i32 = arith.constant 2 : i32
      %29 = arith.addi %c0_i32_12, %c2_i32 : i32
      %c1_i32_13 = arith.constant 1 : i32
      %30 = scf.for %arg7 = %c0_i32_12 to %29 step %c1_i32_13 iter_args(%arg8 = %28) -> (vector<8x128xf32>)  : i32 {
        %c8_i32 = arith.constant 8 : i32
        %32 = arith.muli %arg7, %c8_i32 : i32
        %33 = tpu.assume_multiple %32, 8 : i32
        %34 = arith.index_cast %33 : i32 to index
        %c0_17 = arith.constant 0 : index
        %35 = vector.load %arg6[%34, %c0_17] : memref<16x128xf32, #tpu.memory_space<vmem>>, vector<8x128xf32>
        %36 = arith.addf %arg8, %35 : vector<8x128xf32>
        scf.yield %36 : vector<8x128xf32>
      }
      %c2_i32_14 = arith.constant 2 : i32
      %c0_15 = arith.constant 0 : index
      %c0_16 = arith.constant 0 : index
      %31 = vector.load %arg5[%c0_15, %c0_16] : memref<8x128xf32, #tpu.memory_space<vmem>>, vector<8x128xf32>
      tpu.vector_store %arg5[%c0_15, %c0_16], %30 {strides = array<i32>} : memref<8x128xf32, #tpu.memory_space<vmem>>, vector<8x128xf32>,
    } else {
    }
    return
  }
  func.func @transform_0(%arg0: i32, %arg1: i32, %arg2: memref<1xi32, #tpu.memory_space<smem>>) -> (i32, i32) {
    %c1_i32 = arith.constant 1 : i32
    %0 = arith.muli %arg0, %c1_i32 : i32
    %1 = arith.addi %0, %arg1 : i32
    %c0_i32 = arith.constant 0 : i32
    %2 = arith.minsi %1, %c0_i32 : i32
    %c0_i32_0 = arith.constant 0 : i32
    %c0_i32_1 = arith.constant 0 : i32
    return %2, %c0_i32_0 : i32, i32
  }
  func.func @transform_1(%arg0: i32, %arg1: i32, %arg2: memref<1xi32, #tpu.memory_space<smem>>) -> (i32, i32) {
    %c1_i32 = arith.constant 1 : i32
    %0 = arith.muli %arg0, %c1_i32 : i32
    %1 = arith.addi %0, %arg1 : i32
    %c0_i32 = arith.constant 0 : i32
    %2 = arith.minsi %1, %c0_i32 : i32
    %c0_i32_0 = arith.constant 0 : i32
    %c0_i32_1 = arith.constant 0 : i32
    return %2, %c0_i32_0 : i32, i32
  }
  func.func @transform_2(%arg0: i32, %arg1: i32, %arg2: memref<1xi32, #tpu.memory_space<smem>>) -> (i32, i32) {
    %c0_i32 = arith.constant 0 : i32
    %c0_i32_0 = arith.constant 0 : i32
    return %arg0, %c0_i32 : i32, i32
  }
}

</mosaic_0001>

<bundles_post_ra>
// kernel: tpu_custom_call.1
= control target key start
LH: loop header
LB: loop body
LE: loop exit
PB: predicated region body
PF: predicated region fallthrough
CT: control target
= control target key end

     0   :  { %9 = vsyncpa [#allocation6], 0  ;;  %s307_s0 = inlined_call_operand.<no memory space> [shape: s32[1], index: 0, kind: input, shape index: {}]   ;;  %s308_s1 = inlined_call_operand.hbm [shape: f32[16,128], index: 1, kind: input, shape index: {}]   ;;  %s309_s2 = inlined_call_operand.hbm [shape: f32[16,128], index: 2, kind: input, shape index: {}]   ;;  %s310_s3 = inlined_call_operand.hbm [shape: f32[8,128], index: 3, kind: output, shape index: {}]  }
   0x1   :  { %10 = vsyncpa [#allocation9], 0 }
   0x2   :  { %11 = vsyncpa [#allocation7], 0  ;;  %s22_s14 = sshll.u32 %s308_s1, 4  ;;  %s270_s15 = smov [#allocation5]   ;;  %s23_s14 = int_to_ptr.hbm [resolvable:$true] %s22_s14 }
   0x3   :  { %s24_s16 = sshll.u32 %s270_s15, 4  ;;  %s41_s19 = sshll.u32 %s309_s2, 4  ;;  %s25_s16 = int_to_ptr.vmem [resolvable:$true] %s24_s16  ;;  %s42_s19 = int_to_ptr.hbm [resolvable:$true] %s41_s19 }
   0x4   :  { %s271_s20 = smov 128   ;;  %s272_s21 = smov 8  }
   0x5   :  { %30 = dma.hbm_to_vmem [thread:$0]  %s23_s14, 256, %s25_s16, [#allocation6], %s271_s20, %s271_s20, %s272_s21  }
   0x6   :  { %s273_s22 = smov [#allocation8]  }
   0x7   :  { %s43_s23 = sshll.u32 %s273_s22, 4  ;;  %s44_s23 = int_to_ptr.vmem [resolvable:$true] %s43_s23 }
   0x8   :  { %49 = dma.hbm_to_vmem [thread:$0]  %s42_s19, 256, %s44_s23, [#allocation9], %s271_s20, %s271_s20, %s272_s21  }
   0x9   :  { %256 = dma.done.wait [#allocation6], 256  }
   0xa   :  { %257 = vsyncadd [#allocation6], 4294967040 }
   0xb   :  { %258 = dma.done.wait [#allocation9], 256  }
   0xc   :  { %259 = vsyncadd [#allocation9], 4294967040  ;;  %v82_v0 = vlaneseq  ;;  %v95_v6 = vstv %s307_s0  ;;  %v72_v8 = vld [vmem:[#allocation5] sm:$0xff]  ;;  %v74_v9 = vld [vmem:[#allocation8] sm:$0xff]  ;;  %v262_v19 = vmov 0.0   ;;  %s266_s24 = smov 0  }
   0xd   :  { %v73_v10 = vld [vmem:[#allocation5 + $0x8] sm:$0xff]  ;;  %v76_v11 = vsub.f32 %v72_v8, %v74_v9  ;;  %v75_v12 = vld [vmem:[#allocation8 + $0x8] sm:$0xff] }
   0xe   :  { %v83_v1 = vshrl.u32 %v82_v0, 7  ;;  %v86_v2 = vand.u32 127, %v82_v0  ;;  %v77_v14 = vsub.f32 %v73_v10, %v75_v12 }
   0xf   :  { %v78_v15 = vmul.f32 %v76_v11, %v76_v11 }
  0x10   :  { %v87_v3 = vmul.u32 128, %v83_v1  ;;  %v84_v4 = vadd.s32 8, %v83_v1  ;;  %v79_v16 = vmul.f32 %v77_v14, %v77_v14 }
  0x12   :  { %v92_v5 = vadd.s32 %v87_v3, %v86_v2  ;;  %v88_v7 = vmul.u32 128, %v84_v4 }
  0x14   :  { %v93_v13 = vadd.s32 %v88_v7, %v86_v2  ;;  %vm96_vm0 = vcmp.lt.s32.totalorder %v92_v5, %v95_v6 }
  0x15   :  { %v100_v17 = vsel %vm96_vm0, %v78_v15, 0.0 }
  0x16   :  { %vm97_vm1 = vcmp.lt.s32.totalorder %v93_v13, %v95_v6  ;;  %104 = vst [vmem:[#allocation2] sm:$0xff] %v100_v17 }
  0x17   :  { %v101_v18 = vsel %vm97_vm1, %v79_v16, 0.0 }
  0x18   :  { %105 = vst [vmem:[#allocation2 + $0x8] sm:$0xff] %v101_v18 }
  0x19 LB: > { %s153_s0 = sshll.u32 %s268_s24, 3  ;;  %s114_s24 = sadd.s32 1, %s268_s24   ;;  %s268_s24 = sphi %s266_s24, %s114_s24   ;;  %v264_v19 = vphi %v262_v19, %v263_v19  }
  0x1a   : > { %s117_s25 = scalar_lea.vmem [#allocation2], %s153_s0  ;;  %p111_p0 = scmp.ge.s32.totalorder %s114_s24, 2  }
  0x1b   :  { %s128_s28 = sshll.u32 (%p111_p0), %s310_s3, 4  ;;  %s274_s29 = smov (%p111_p0), [#allocation10]   ;;  %s129_s28 = int_to_ptr.hbm [resolvable:$true] %s128_s28 }
  0x1c   :  { %s126_s30 = sshll.u32 (%p111_p0), %s274_s29, 4  ;;  %s127_s30 = int_to_ptr.vmem [resolvable:$true] %s126_s30 }
  0x1e   :  { %113 = sbr.rel (!%p111_p0) target bundleno = 25 (0x19), region = 54 }
  0x1f   : > { %v118_v20 = vld [vmem:[%s117_s25] sm:$0xff] }
  0x20   : > { %v119_v21 = vadd.f32 %v264_v19, %v118_v20  }
  0x22   : > { %v263_v19 = vmov %v119_v21   ;;  %120 = vst [vmem:[#allocation10] sm:$0xff] (%p111_p0), %v119_v21 }
  0x23   :  { %131 = dma.vmem_to_hbm [thread:$0]  %s127_s30, 128, %s129_s28, [#allocation7]  }
  0x24   :  { %260 = dma.done.wait [#allocation7], 128  }
  0x25   :  { %261 = vsyncadd [#allocation7], 4294967168 }
  0x26   :  { %136 = vsyncpa [#allocation6], 1 }
  0x27   :  { %137 = vsyncpa [#allocation9], 1 }
  0x28   :  { %138 = vsyncpa [#allocation7], 1 }

</bundles_post_ra>
